<compile_context>
chip_gen: v7x
topology: tpu7x:2x2x1
jax: 0.10.0
libtpu: 0.0.40
codegen_flags: <defaults>
</compile_context>

<pallas_src>
import functools
import math

import jax
import jax.numpy as jnp
from jax.experimental import pallas as pl
from jax.experimental.pallas import tpu as pltpu

_MIN_GRID_STEPS = 4          # enough steps to pipeline & shard across 2 TCs (v7x)
_MIB = 1024 * 1024


def _tpu_budgets():
    """(target_block_bytes, base_vmem_limit, vmem_capacity) per TPU generation."""
    try:
        info = pltpu.get_tpu_info()
        vmem_cap = int(getattr(info, "vmem_capacity_bytes", 0)) or 128 * _MIB
    except Exception:  # non-TPU backend / older runtime: conservative defaults
        vmem_cap = 128 * _MIB
    if vmem_cap <= 64 * _MIB:
        # v7x-class: ~3.2 TB/s HBM but only 64 MiB VMEM -> larger blocks to
        # amortize the ~0.35 us/step cost, scoped budget well under physical.
        return 6 * _MIB, 40 * _MIB, vmem_cap
    # v5e / v6e: 128 MiB VMEM; 2-4 MiB blocks already sit at the HBM roofline.
    return 3 * _MIB, 64 * _MIB, vmem_cap


def _vmem_limit(block_bytes, base_limit, vmem_cap):
    # Footprint ~= double-buffered input + double-buffered outputs ~= 4x block.
    need = 5 * block_bytes + 4 * _MIB
    return int(min(max(base_limit, need), (vmem_cap * 3) // 4))


def _pick_tile(extent, max_elems, align, min_steps=1):
    """Tile along one axis: a multiple of `align` (or the full extent when the
    axis is shorter than `align`), capped by `max_elems`, and small enough to
    yield >= `min_steps` grid steps when the extent permits. Works with cdiv
    grids; ragged tails are masked by Pallas."""
    if extent <= align:
        return extent                      # full extent is always layout-legal

    def _floor_align(v):
        return max(align, (v // align) * align)

    t = _floor_align(min(extent, max(align, max_elems)))
    if min_steps > 1:
        t = min(t, _floor_align(max(1, extent // min_steps)))
    return t


def _chunk_kernel(x_ref, *o_refs, starts, sizes):
    # x_ref : (TB, D[, TP]) input tile with the chunk axis at position 1.
    # o_refs: one (TB, size_c[, TP]) tile per chunk.
    # Static slices -> pure VMEM copies; the input tile is DMA'd from HBM once
    # and fanned out to every chunk output.
    # NOTE: chunk starts/sizes that are not sublane-aligned (8 for f32) make the
    # slice cross (8,128) tiles and Mosaic adds XLU relayout copies; correct,
    # just extra on-chip traffic.
    trailing = (slice(None),) * (len(x_ref.shape) - 2)
    for o_ref, start, size in zip(o_refs, starts, sizes):
        o_ref[...] = x_ref[(slice(None), slice(start, start + size)) + trailing]


def _dma_chunk_kernel(x_ref, *args, starts, sizes):
    # Chunk axis is the leading axis -> every chunk is a contiguous slab; copy
    # it HBM->HBM with async DMA (no VMEM staging, no grid overhead). All DMAs
    # are started before any wait so they stay in flight concurrently.
    n = len(sizes)
    o_refs, sem = args[:n], args[n]
    copies = []
    for c, (o_ref, start, size) in enumerate(zip(o_refs, starts, sizes)):
        cp = pltpu.make_async_copy(x_ref.at[pl.ds(start, size)], o_ref, sem.at[c])
        cp.start()
        copies.append(cp)
    for cp in copies:
        cp.wait()


def _fused_chunk_dma(x_nd, starts, sizes, nbytes):
    rest = tuple(x_nd.shape[1:])
    kernel = functools.partial(_dma_chunk_kernel, starts=tuple(starts),
                               sizes=tuple(sizes))
    return pl.pallas_call(
        kernel,
        out_shape=tuple(jax.ShapeDtypeStruct((s,) + rest, x_nd.dtype) for s in sizes),
        in_specs=[pl.BlockSpec(memory_space=pl.ANY)],
        out_specs=tuple(pl.BlockSpec(memory_space=pl.ANY) for _ in sizes),
        scratch_shapes=[pltpu.SemaphoreType.DMA((len(sizes),))],
        compiler_params=pltpu.CompilerParams(has_side_effects=True),
        cost_estimate=pl.CostEstimate(flops=0, transcendentals=0,
                                      bytes_accessed=2 * nbytes),
    )(x_nd)


def _fused_chunk_3d(x3, starts, sizes, tb, tp, vmem_limit, nbytes):
    pre, D, post = x3.shape
    grid = (pl.cdiv(pre, tb), pl.cdiv(post, tp))
    kernel = functools.partial(_chunk_kernel, starts=tuple(starts), sizes=tuple(sizes))
    # TODO(synk): sweep pipeline_mode=pl.Buffered(3) on the input spec (minor).
    return pl.pallas_call(
        kernel,
        out_shape=tuple(jax.ShapeDtypeStruct((pre, s, post), x3.dtype) for s in sizes),
        grid_spec=pltpu.PrefetchScalarGridSpec(
            num_scalar_prefetch=0,
            grid=grid,
            in_specs=[pl.BlockSpec((tb, D, tp), lambda i, j: (i, 0, j))],
            out_specs=tuple(
                pl.BlockSpec((tb, s, tp), lambda i, j: (i, 0, j)) for s in sizes),
        ),
        compiler_params=pltpu.CompilerParams(
            dimension_semantics=("parallel", "parallel"),
            vmem_limit_bytes=vmem_limit,
        ),
        cost_estimate=pl.CostEstimate(flops=0, transcendentals=0,
                                      bytes_accessed=2 * nbytes),
    )(x3)


def _fused_chunk_2d(x2, starts, sizes, tb, vmem_limit, nbytes):
    pre, D = x2.shape
    grid = (pl.cdiv(pre, tb),)
    kernel = functools.partial(_chunk_kernel, starts=tuple(starts), sizes=tuple(sizes))
    return pl.pallas_call(
        kernel,
        out_shape=tuple(jax.ShapeDtypeStruct((pre, s), x2.dtype) for s in sizes),
        grid_spec=pltpu.PrefetchScalarGridSpec(
            num_scalar_prefetch=0,
            grid=grid,
            in_specs=[pl.BlockSpec((tb, D), lambda i: (i, 0))],
            out_specs=tuple(pl.BlockSpec((tb, s), lambda i: (i, 0)) for s in sizes),
        ),
        compiler_params=pltpu.CompilerParams(
            dimension_semantics=("parallel",),
            vmem_limit_bytes=vmem_limit,
        ),
        cost_estimate=pl.CostEstimate(flops=0, transcendentals=0,
                                      bytes_accessed=2 * nbytes),
    )(x2)


def chunk(tensor, chunks, dim=0):
    """Pallas equivalent of torch.Tensor.chunk(chunks, dim)."""
    ndim = tensor.ndim
    if dim < 0:
        dim += ndim
    shape = tuple(tensor.shape)
    D = shape[dim]

    # torch.chunk semantics: csize = ceil(D / chunks); fewer chunks may come
    # back and the last one may be smaller.
    csize = -(-D // chunks)
    n_chunks = -(-D // csize)
    starts = [c * csize for c in range(n_chunks)]
    sizes = [min(csize, D - st) for st in starts]

    pre = int(math.prod(shape[:dim]))
    post = int(math.prod(shape[dim + 1:]))
    itemsize = jnp.dtype(tensor.dtype).itemsize
    nbytes = pre * D * post * itemsize

    def _restore(outs):
        return tuple(
            o.reshape(shape[:dim] + (s,) + shape[dim + 1:])
            for o, s in zip(outs, sizes))

    # ---- Fast path: chunk axis is the leading (contiguous) axis -------------
    # Each chunk is a contiguous byte range -> direct HBM->HBM DMA, no VMEM.
    if pre == 1:
        x_nd = tensor.reshape((D,) + shape[dim + 1:])   # drop leading 1-dims (free)
        return _restore(_fused_chunk_dma(x_nd, starts, sizes, nbytes))

    target_block, base_limit, vmem_cap = _tpu_budgets()

    # ---- Chunk axis is the last axis: keep it on lanes (2-D layout) so the
    # input stays lane-dense. Output chunks narrower than 128 lanes still pay
    # masked stores; that is the best layout available without a relayout. ----
    if post == 1:
        row_bytes = max(1, D * itemsize)
        tb = _pick_tile(pre, max(8, target_block // row_bytes), 8,
                        min_steps=_MIN_GRID_STEPS)
        vlim = _vmem_limit(tb * row_bytes, base_limit, vmem_cap)
        return _restore(
            _fused_chunk_2d(tensor.reshape(pre, D), starts, sizes, tb, vlim, nbytes))

    # ---- General case: isolate the chunk axis as (pre, D, post). ------------
    x3 = tensor.reshape(pre, D, post)
    col_bytes = max(1, D * itemsize)
    if post <= 128:
        tp = post                                             # full lane extent
    else:
        tp = _pick_tile(post, max(128, target_block // col_bytes), 128)
    post_steps = pl.cdiv(post, tp)
    slab_bytes = max(1, D * tp * itemsize)
    # Leading (parallel) axis: no alignment constraint; keep >=2 steps so the
    # two v7x TensorCores both get work, and >=4 total steps overall.
    min_steps_pre = max(2, -(-_MIN_GRID_STEPS // post_steps))
    tb = _pick_tile(pre, max(1, target_block // slab_bytes), 1,
                    min_steps=min_steps_pre)
    vlim = _vmem_limit(tb * slab_bytes, base_limit, vmem_cap)
    # TODO(synk): for pathological shapes (huge D with tb==1, tp==128) a single
    # block can still exceed the scoped-VMEM cap; tiling D would require
    # per-block chunk masking and is not implemented.
    return _restore(_fused_chunk_3d(x3, starts, sizes, tb, tp, vlim, nbytes))


class Chunk:
    """JAX/Pallas mirror of federatedml ... grouping.Chunk (no parameters)."""

    def __init__(self, chunks, dim=0):
        self.chunks = chunks
        self.dim = dim

    def __call__(self, tensor):
        return chunk(tensor, self.chunks, self.dim)


if __name__ == "__main__":
    key = jax.random.PRNGKey(0)

    # NCHW conv-style tensor, chunk over channels (3-D tiled path).
    x = jax.random.normal(key, (2, 4, 16, 16), dtype=jnp.float32)
    outs = jax.block_until_ready(Chunk(chunks=2, dim=1)(x))
    refs = jnp.split(x, 2, axis=1)
    assert len(outs) == 2
    for o, r in zip(outs, refs):
        assert o.shape == r.shape and o.dtype == r.dtype
        assert jnp.allclose(o, r)

    # Uneven chunk along dim=0 -> leading-axis contiguous DMA fast path,
    # plus torch.chunk ragged semantics (smaller last chunk).
    y = jax.random.normal(jax.random.PRNGKey(1), (5, 8, 128), dtype=jnp.float32)
    outs2 = jax.block_until_ready(Chunk(chunks=2, dim=0)(y))
    assert outs2[0].shape == (3, 8, 128) and outs2[1].shape == (2, 8, 128)
    assert jnp.allclose(jnp.concatenate(outs2, axis=0), y)

    # Chunk along the last axis -> lane-dense 2-D path with a 4-step grid.
    z = jax.random.normal(jax.random.PRNGKey(2), (8, 4, 32), dtype=jnp.float32)
    outs3 = jax.block_until_ready(Chunk(chunks=4, dim=-1)(z))
    assert all(o.shape == (8, 4, 8) for o in outs3)
    assert jnp.allclose(jnp.concatenate(outs3, axis=-1), z)

    # Non-128-multiple trailing extent -> exercises cdiv grid + masked lane tail.
    w = jax.random.normal(jax.random.PRNGKey(3), (2, 4, 16, 20), dtype=jnp.float32)
    outs4 = jax.block_until_ready(Chunk(chunks=2, dim=1)(w))
    refs4 = jnp.split(w, 2, axis=1)
    assert all(o.shape == r.shape and jnp.allclose(o, r) for o, r in zip(outs4, refs4))

    # Odd leading extent + uneven chunk sizes on the last axis
    # -> exercises masked sublane tail on the 2-D path.
    v = jax.random.normal(jax.random.PRNGKey(4), (5, 3, 3), dtype=jnp.float32)
    outs5 = jax.block_until_ready(Chunk(chunks=2, dim=2)(v))
    assert outs5[0].shape == (5, 3, 2) and outs5[1].shape == (5, 3, 1)
    assert jnp.allclose(jnp.concatenate(outs5, axis=-1), v)

    print("KERNEL_OK")
</pallas_src>

<mosaic_0001>
module attributes {stable_mosaic.version = 11 : i64} {
  func.func @_chunk_kernel(%arg0: i32, %arg1: i32, %arg2: memref<1x4x256xf32, #tpu.memory_space<vmem>>, %arg3: memref<1x2x256xf32, #tpu.memory_space<vmem>>, %arg4: memref<1x2x256xf32, #tpu.memory_space<vmem>>) attributes {dimension_semantics = [#tpu.dimension_semantics<parallel>, #tpu.dimension_semantics<parallel>], iteration_bounds = array<i64: 2, 1>, scalar_prefetch = 0 : i64, scratch_operands = 0 : i64, tpu.core_type = #tpu.core_type<tc>, window_params = [{transform_indices = @transform_0, window_bounds = array<i64: 1, 4, 256>}, {transform_indices = @transform_1, window_bounds = array<i64: 1, 2, 256>}, {transform_indices = @transform_2, window_bounds = array<i64: 1, 2, 256>}]} {
    %c0 = arith.constant 0 : index
    %c0_0 = arith.constant 0 : index
    %c0_1 = arith.constant 0 : index
    %0 = vector.load %arg2[%c0, %c0_0, %c0_1] : memref<1x4x256xf32, #tpu.memory_space<vmem>>, vector<1x2x256xf32>
    %c0_2 = arith.constant 0 : index
    %c0_3 = arith.constant 0 : index
    %c0_4 = arith.constant 0 : index
    %1 = vector.load %arg3[%c0_2, %c0_3, %c0_4] : memref<1x2x256xf32, #tpu.memory_space<vmem>>, vector<1x2x256xf32>
    tpu.vector_store %arg3[%c0_2, %c0_3, %c0_4], %0 {strides = array<i32>} : memref<1x2x256xf32, #tpu.memory_space<vmem>>, vector<1x2x256xf32>,
    %c0_5 = arith.constant 0 : index
    %c2 = arith.constant 2 : index
    %c0_6 = arith.constant 0 : index
    %2 = vector.load %arg2[%c0_5, %c2, %c0_6] : memref<1x4x256xf32, #tpu.memory_space<vmem>>, vector<1x2x256xf32>
    %c0_7 = arith.constant 0 : index
    %c0_8 = arith.constant 0 : index
    %c0_9 = arith.constant 0 : index
    %3 = vector.load %arg4[%c0_7, %c0_8, %c0_9] : memref<1x2x256xf32, #tpu.memory_space<vmem>>, vector<1x2x256xf32>
    tpu.vector_store %arg4[%c0_7, %c0_8, %c0_9], %2 {strides = array<i32>} : memref<1x2x256xf32, #tpu.memory_space<vmem>>, vector<1x2x256xf32>,
    return
  }
  func.func @transform_0(%arg0: i32, %arg1: i32) -> (i32, i32, i32) {
    %c0_i32 = arith.constant 0 : i32
    %c0_i32_0 = arith.constant 0 : i32
    return %arg0, %c0_i32, %arg1 : i32, i32, i32
  }
  func.func @transform_1(%arg0: i32, %arg1: i32) -> (i32, i32, i32) {
    %c0_i32 = arith.constant 0 : i32
    %c0_i32_0 = arith.constant 0 : i32
    return %arg0, %c0_i32, %arg1 : i32, i32, i32
  }
  func.func @transform_2(%arg0: i32, %arg1: i32) -> (i32, i32, i32) {
    %c0_i32 = arith.constant 0 : i32
    %c0_i32_0 = arith.constant 0 : i32
    return %arg0, %c0_i32, %arg1 : i32, i32, i32
  }
}

</mosaic_0001>

<bundles_post_ra>
// kernel: tpu_custom_call.1
= control target key start
LH: loop header
LB: loop body
LE: loop exit
PB: predicated region body
PF: predicated region fallthrough
CT: control target
= control target key end

     0   :  { %8 = vsyncpa [#allocation3], 0  ;;  %s835_s0 = inlined_call_operand.hbm [shape: f32[2,4,256], index: 0, kind: input, shape index: {}]   ;;  %s836_s1 = inlined_call_operand.hbm [shape: f32[2,2,256], index: 1, kind: output, shape index: {0}]   ;;  %s837_s2 = inlined_call_operand.hbm [shape: f32[2,2,256], index: 2, kind: output, shape index: {1}]  }
   0x1   :  { %10 = vsyncpa [#allocation3 + $0x1], 0 }
   0x2   :  { %11 = vsyncpa [#allocation4], 0 }
   0x3   :  { %13 = vsyncpa [#allocation4 + $0x1], 0 }
   0x4   :  { %14 = vsyncpa [#allocation7], 0 }
   0x5   :  { %16 = vsyncpa [#allocation7 + $0x1], 0  ;;  %s629_s9 = smov 0   ;;  %s631_s10 = smov 0  }
   0x6   :  { %s633_s11 = smov 0   ;;  %s635_s12 = smov 0  }
   0x7   :  { %s637_s13 = smov 0   ;;  %s639_s14 = smov 0  }
   0x8 LB: > { %s374_s15 = sadd.s32 4294967295, %s609_s14   ;;  %s375_s16 = sadd.s32 4294967294, %s609_s14   ;;  %s609_s14 = sphi %s639_s14, %s22_s14   ;;  %s605_s13 = sphi %s637_s13, %s853_s13   ;;  %s601_s12 = sphi %s635_s12, %s852_s12   ;;  %s597_s11 = sphi %s633_s11, %s851_s11   ;;  %s593_s10 = sphi %s631_s10, %s850_s10   ;;  %s589_s9 = sphi %s629_s9, %s849_s9  }
   0x9   : > { %s34_s17 = sadd.s32 1, %s605_s13  ;;  %s43_s18 = sadd.s32 1, %s597_s11 }
   0xa   : > { %p36_p0 = scmp.ge.s32.totalorder %s34_s17, 2  ;;  %p50_p1 = scmp.ne.s32.totalorder %s597_s11, %s593_s10 }
   0xb   : > { %p51_p2 = scmp.eq.s32.totalorder %s609_s14, 0  ;;  %p56_p3 = scmp.ne.s32.totalorder %s593_s10, %s589_s9 }
   0xc   : > { %s855_s17 = smov (%p36_p0, %s34_s17), 0  ;;  %p57_p5 = scmp.eq.s32.totalorder %s374_s15, 0 }
   0xd   : > { %p670_p4 = por %p51_p2, %p50_p1  ;;  %s38_s20 = ssub.s32 %s605_s13, %s855_s17 }
   0xe   : > { %p82_p6 = scmp.eq.s32.totalorder %s374_s15, 1  ;;  %p41_p7 = scmp.eq.s32.totalorder %s38_s20, 0 }
   0xf   : > { %p676_p8 = por %p57_p5, %p56_p3  ;;  %p88_p10 = scmp.eq.s32.totalorder %s375_s16, 1 }
  0x10   : > { %p680_p9 = por %p82_p6, %p50_p1  ;;  %p415_p13 = scmp.lt.s32.totalorder %s609_s14, 2 }
  0x11   : > { %s685_s23 = scalar_select %p41_p7, %s597_s11, %s43_s18  }
  0x12   : > { %s841_s22 = scalar_select %p680_p9, 1, 0 }
  0x13   : > { %p687_p11 = por %p88_p10, %p56_p3  ;;  %s136_s25 = sand.u32 1, %s597_s11  }
  0x14   : > { %s378_s26 = sshll.u32 %s136_s25, 3  ;;  %s395_s27 = sshll.u32 %s605_s13, 7 }
  0x15   : > { %s842_s24 = scalar_select %p687_p11, 1, 0 }
  0x16   : > { %s698_s30 = scalar_lea.hbm %s835_s0, %s395_s27  ;;  %s140_s3 = scalar_lea.vmem [#allocation2], %s378_s26 }
  0x17   : > { %s150_s4 = sshll.u32 %s140_s3, 4  ;;  %p704_p0 = pnand %p415_p13, %p670_p4  ;;  %s700_s4 = int_to_ptr.vmem [resolvable:$true] %s150_s4 }
  0x18   : > { %s137_s6 = scalar_lea.sflag [#allocation3], %s136_s25  ;;  %s465_s7 = scalar_lea.hbm %s698_s30, 128 }
  0x19   : > { %p466_p3 = scmp.ne.s32.totalorder %s698_s30, %s465_s7  ;;  %p467_p5 = pneg %p704_p0 }
  0x1a   : > { %s470_s16 = scalar_lea.hbm %s835_s0, 256  ;;  %p471_p4 = scmp.lt.u32.totalorder %s698_s30, %s835_s0 }
  0x1b   : > { %p468_p6 = pnand %p467_p5, %p466_p3  ;;  %p472_p10 = scmp.lt.u32.totalorder %s470_s16, %s465_s7 }
  0x1c   : > { %p474_p12 = scmp.lt.u32.totalorder %s465_s7, %s698_s30 }
  0x1d   : > { %p469_p7 = pneg %p468_p6  ;;  %p473_p13 = por %p472_p10, %p471_p4 }
  0x1f   : > { %p475_p1 = por %p474_p12, %p473_p13 }
  0x21   : > { %p476_p2 = pnand %p475_p1, %p469_p7 }
  0x23   : > { %479 = shalt.err (!%p476_p2)
}
  0x24   : > { %s480_s20 = scalar_lea.vmem %s700_s4, 128  ;;  %s611_s25 = smov [#allocation2]  }
  0x25   : > { %p481_p3 = scmp.ne.s32.totalorder %s700_s4, %s480_s20  ;;  %s485_s26 = sshll.u32 %s611_s25, 4  ;;  %s486_s26 = int_to_ptr.vmem [resolvable:$false] %s485_s26 }
  0x26   : > { %s487_s27 = scalar_lea.vmem %s486_s26, 256  ;;  %p488_p9 = scmp.lt.s32.totalorder %s700_s4, %s486_s26 }
  0x27   : > { %p483_p6 = pnand %p481_p3, %p467_p5  ;;  %p489_p4 = scmp.lt.s32.totalorder %s487_s27, %s480_s20 }
  0x29   : > { %p484_p11 = pneg %p483_p6  ;;  %p490_p10 = por %p489_p4, %p488_p9 }
  0x2b   : > { %p491_p12 = pnand %p490_p10, %p484_p11 }
  0x2d   : > { %494 = shalt.err (!%p491_p12)
}
  0x2e   : > { %407 = dma.hbm_to_vmem [thread:$0]  (!%p704_p0), %s698_s30, 128, %s700_s4, %s137_s6  }
  0x2f   : > { %p844_p1 = scmp.lt.s32.totalorder %s609_s14, 3  ;;  %p845_p2 = scmp.ge.s32.totalorder %s609_s14, 1 }
  0x31   : > { %p156_p5 = pnand %p845_p2, %p844_p1 }
  0x32   : > { %s740_s28 = sand.u32 (!%p156_p5), 1, %s593_s10  }
  0x33   : > { %159 = sbr.rel (%p156_p5) target bundleno = 110 (0x6e), region = 24  ;;  %s382_s29 = sshll.u32 (!%p156_p5), %s740_s28, 3 }
  0x34   : > { %s162_s3 = scalar_lea.sflag (!%p156_p5), [#allocation3], %s740_s28  ;;  %s165_s7 = scalar_lea.vmem (!%p156_p5), [#allocation2], %s382_s29 }
  0x3a   : > { %576 = dma.done.wait (%p676_p8), %s162_s3, 128  }
  0x3b   : > { %578 = vsyncadd (%p676_p8), %s162_s3, 4294967168  ;;  %s383_s30 = sshll.u32 %s740_s28, 2  ;;  %s396_s15 = sshll.u32 %s601_s12, 6 }
  0x3c   : > { %s183_s4 = scalar_lea.vmem [#allocation5], %s383_s30  ;;  %s749_s6 = scalar_lea.vmem [#allocation6], %s383_s30  ;;  %v385_v0 = vld.sshfl [vmem:[%s165_s7] sm:$0xf pattern:$0x76325410] }
  0x3d   : > { %s239_s5 = sshll.u32 %s183_s4, 4  ;;  %s255_s8 = sshll.u32 %s749_s6, 4  ;;  %204 = vst [vmem:[%s183_s4] sm:$0xf] %v385_v0  ;;  %s753_s5 = int_to_ptr.vmem [resolvable:$true] %s239_s5  ;;  %s760_s8 = int_to_ptr.vmem [resolvable:$true] %s255_s8 }
  0x3e   : > { %s758_s21 = scalar_lea.hbm %s836_s1, %s396_s15  ;;  %v386_v1 = vld.sshfl [vmem:[%s165_s7] sm:$0xf0 pattern:$0x76325410]  ;;  %s765_s25 = scalar_lea.hbm %s837_s2, %s396_s15 }
  0x3f   : > { %v214_v2 = vcombine.high %v386_v1, %v386_v1  ;;  %s218_s12 = scalar_lea.sflag [#allocation4], %s740_s28  ;;  %s495_s26 = scalar_lea.vmem %s753_s5, 64 }
  0x40   : > { %p496_p8 = scmp.ne.s32.totalorder %s753_s5, %s495_s26  ;;  %p846_p9 = scmp.ne.s32.totalorder %s841_s22, 0 }
  0x41   : > { %s612_s27 = smov [#allocation5]  }
  0x42   : > { %p497_p11 = pnand %p496_p8, %p846_p9  ;;  %s499_s29 = sshll.u32 %s612_s27, 4  ;;  %s500_s29 = int_to_ptr.vmem [resolvable:$false] %s499_s29 }
  0x43   : > { %s501_s3 = scalar_lea.vmem %s500_s29, 128  ;;  %p502_p7 = scmp.lt.s32.totalorder %s753_s5, %s500_s29 }
  0x44   : > { %p498_p0 = pneg %p497_p11  ;;  %p503_p13 = scmp.lt.s32.totalorder %s501_s3, %s495_s26 }
  0x46   : > { %p504_p3 = por %p503_p13, %p502_p7 }
  0x48   : > { %p505_p6 = pnand %p504_p3, %p498_p0 }
  0x4a   : > { %508 = shalt.err (!%p505_p6)
}
  0x4b   : > { %s509_s7 = scalar_lea.hbm %s758_s21, 64  ;;  %s513_s15 = scalar_lea.hbm %s836_s1, 128 }
  0x4c   : > { %p510_p4 = scmp.ne.s32.totalorder %s758_s21, %s509_s7  ;;  %p514_p1 = scmp.lt.u32.totalorder %s758_s21, %s836_s1 }
  0x4d   : > { %p515_p2 = scmp.lt.u32.totalorder %s513_s15, %s509_s7  ;;  %p517_p8 = scmp.lt.u32.totalorder %s509_s7, %s758_s21 }
  0x4e   : > { %p511_p10 = pnand %p510_p4, %p846_p9 }
  0x4f   : > { %p516_p5 = por %p515_p2, %p514_p1 }
  0x50   : > { %p512_p12 = pneg %p511_p10 }
  0x51   : > { %p518_p11 = por %p517_p8, %p516_p5 }
  0x53   : > { %p519_p0 = pnand %p518_p11, %p512_p12 }
  0x55   : > { %522 = shalt.err (!%p519_p0)
}
  0x56   : > { %400 = dma.vmem_to_hbm [thread:$0]  (%p846_p9), %s753_s5, 64, %s758_s21, %s218_s12   ;;  %216 = vst [vmem:[%s749_s6] sm:$0xf] %v214_v2 }
  0x57   : > { %s223_s19 = scalar_lea.sflag [#allocation7], %s740_s28  ;;  %s523_s20 = scalar_lea.vmem %s760_s8, 64 }
  0x58   : > { %p524_p7 = scmp.ne.s32.totalorder %s760_s8, %s523_s20  ;;  %s613_s26 = smov [#allocation6]  }
  0x59   : > { %s527_s27 = sshll.u32 %s613_s26, 4  ;;  %s528_s27 = int_to_ptr.vmem [resolvable:$false] %s527_s27 }
  0x5a   : > { %p525_p13 = pnand %p524_p7, %p846_p9  ;;  %s529_s29 = scalar_lea.vmem %s528_s27, 128 }
  0x5b   : > { %p530_p6 = scmp.lt.s32.totalorder %s760_s8, %s528_s27  ;;  %p531_p4 = scmp.lt.s32.totalorder %s529_s29, %s523_s20 }
  0x5c   : > { %p526_p3 = pneg %p525_p13 }
  0x5d   : > { %p532_p10 = por %p531_p4, %p530_p6 }
  0x5f   : > { %p533_p12 = pnand %p532_p10, %p526_p3 }
  0x61   : > { %536 = shalt.err (!%p533_p12)
}
  0x62   : > { %s537_s28 = scalar_lea.hbm %s765_s25, 64  ;;  %s541_s21 = scalar_lea.hbm %s837_s2, 128 }
  0x63   : > { %p538_p1 = scmp.ne.s32.totalorder %s765_s25, %s537_s28  ;;  %p542_p8 = scmp.lt.u32.totalorder %s765_s25, %s837_s2 }
  0x64   : > { %p543_p11 = scmp.lt.u32.totalorder %s541_s21, %s537_s28  ;;  %p545_p7 = scmp.lt.u32.totalorder %s537_s28, %s765_s25 }
  0x65   : > { %p539_p2 = pnand %p538_p1, %p846_p9 }
  0x66   : > { %p544_p0 = por %p543_p11, %p542_p8 }
  0x67   : > { %p540_p5 = pneg %p539_p2 }
  0x68   : > { %p546_p13 = por %p545_p7, %p544_p0 }
  0x6a   : > { %p547_p3 = pnand %p546_p13, %p540_p5 }
  0x6c   : > { %550 = shalt.err (!%p547_p3)
}
  0x6d   : > { %401 = dma.vmem_to_hbm [thread:$0]  (%p846_p9), %s760_s8, 64, %s765_s25, %s223_s19  }
  0x6e PF: > { %s267_s7 = sand.u32 1, %s589_s9   ;;  %p847_p6 = scmp.ne.s32.totalorder %s842_s24, 0 }
  0x6f   : > { %p848_p4 = scmp.ge.s32.totalorder %s609_s14, 2  ;;  %s268_s30 = scalar_lea.sflag [#allocation4], %s267_s7 }
  0x71   : > { %p409_p10 = pnand %p848_p4, %p847_p6 }
  0x73   : > { %580 = dma.done.wait (!%p409_p10), %s268_s30, 64  }
  0x74   : > { %582 = vsyncadd (!%p409_p10), %s268_s30, 4294967232  ;;  %s277_s4 = scalar_lea.sflag [#allocation7], %s267_s7 }
  0x75   : > { %584 = dma.done.wait (!%p409_p10), %s277_s4, 64  }
  0x76   : > { %586 = vsyncadd (!%p409_p10), %s277_s4, 4294967232  ;;  %s22_s14 = sadd.s32 1, %s609_s14   ;;  %s849_s9 = smov %s593_s10 }
  0x77   : > { %p19_p12 = scmp.ge.s32.totalorder %s22_s14, 4   ;;  %s850_s10 = smov %s597_s11 }
  0x78   : > { %s851_s11 = smov %s685_s23  ;;  %s852_s12 = smov %s605_s13 }
  0x79   : > { %s853_s13 = smov %s855_s17  ;;  %21 = sbr.rel (!%p19_p12) target bundleno = 8 (0x8), region = 86 }
  0x80   :  { %282 = vsyncpa [#allocation3], 1 }
  0x81   :  { %284 = vsyncpa [#allocation3 + $0x1], 1 }
  0x82   :  { %285 = vsyncpa [#allocation4], 1 }
  0x83   :  { %287 = vsyncpa [#allocation4 + $0x1], 1 }
  0x84   :  { %288 = vsyncpa [#allocation7], 1 }
  0x85   :  { %290 = vsyncpa [#allocation7 + $0x1], 1 }

</bundles_post_ra>
